<compile_context>
chip_gen: v5e
topology: v5e:2x2
jax: 0.10.0
libtpu: 0.0.40
codegen_flags: <defaults>
</compile_context>

<pallas_src>
import functools

import jax
import jax.numpy as jnp
from jax.experimental import pallas as pl
from jax.experimental.pallas import tpu as pltpu

LANE = 128       # vreg / MXU lane width
SUBLANE = 8      # sublane granularity for batch tiles
SPLIT_MIN = 512  # batches >= this are split into >=2 grid steps (v7x megacore)


def _round_up(x, m):
    return (x + m - 1) // m * m


def _cdiv(a, b):
    return (a + b - 1) // b


def _pick_batch_tile(batch, max_tile):
    """Large tiles amortize the ~0.35us per-grid-step overhead; mid-size batches
    are split into >=2 'parallel' steps so both v7x TensorCores get work."""
    bp = _round_up(batch, SUBLANE)
    if bp <= max_tile:
        if bp >= SPLIT_MIN:
            return _round_up(_cdiv(bp, 2), SUBLANE)
        return bp  # tiny batch: one tile; splitting would just add overhead
    return max_tile


def _tpu_supports_bf16_eup():
    """bf16 tanh is a win on v6e/v7x (bf16 VPU/EUP); v5e has no bf16 path."""
    try:
        kind = jax.devices()[0].device_kind.lower()
    except Exception:
        return False
    return ("v6" in kind) or ("v7" in kind) or ("7x" in kind)


def critic_mlp_kernel(x_ref,
                      w1_ref, b1_ref, w2_ref, b2_ref,
                      w3_ref, b3_ref, w4_ref, b4_ref,
                      w5_ref, b5_ref,
                      out_ref, *, bf16_tanh):
    """Whole critic MLP for one (batch_tile, state_dim) activation tile.

    Matmul operands are bf16 (MXU fast path on all generations); accumulation
    and bias add are f32. The last Linear(hidden -> 1) is a VPU multiply by the
    single real weight column + a lane reduction, so the output tile is exactly
    the real (batch_tile, 1) f32 value column (no padded writeback).
    """
    h = x_ref[...].astype(jnp.bfloat16)   # bf16 cast in-kernel (no wrapper round-trip)
    for w_ref, b_ref in ((w1_ref, b1_ref), (w2_ref, b2_ref),
                         (w3_ref, b3_ref), (w4_ref, b4_ref)):
        acc = jnp.dot(h, w_ref[...], preferred_element_type=jnp.float32) + b_ref[...]
        if bf16_tanh:
            h = jnp.tanh(acc.astype(jnp.bfloat16))     # v6e/v7x: bf16 EUP path
        else:
            h = jnp.tanh(acc).astype(jnp.bfloat16)     # v5e: f32 tanh, cast after
    # Final Linear(hidden -> 1): w5 is the (1, hidden_p) real column row, b5 is (1, 1).
    v = jnp.sum(h * w5_ref[...], axis=-1, keepdims=True) + b5_ref[...]
    out_ref[...] = v.astype(out_ref.dtype)


def make_critic_params(key, state_dim, hidden_size, dtype=jnp.float32):
    """Orthogonal-init parameters matching the PyTorch critic (bias = 0)."""
    ortho = jax.nn.initializers.orthogonal(scale=1.0)
    dims = [state_dim, hidden_size, hidden_size, hidden_size, hidden_size, 1]
    keys = jax.random.split(key, len(dims) - 1)
    params = []
    for k, d_in, d_out in zip(keys, dims[:-1], dims[1:]):
        w = ortho(k, (d_in, d_out), dtype)   # (in, out) layout == PyTorch W.T
        b = jnp.zeros((d_out,), dtype)       # orthogonal_init zeroes the bias
        params.append((w, b))
    return params


def pack_critic_params(params, compute_dtype=jnp.bfloat16):
    """Prepare parameters for the kernel.

    * W1's input dim stays unpadded (partial-K MXU matmul) so the kernel can
      consume the raw (B, state_dim) input directly.
    * Hidden dims are zero-padded to a multiple of 128 only when needed
      (hidden=512 default needs none); padding is semantics-preserving because
      padded weight rows/cols and biases are zero (tanh(0)=0 never contributes).
    * Hidden-layer weights are bf16 (MXU operands); biases stay f32 rows.
    * The last (hidden, 1) layer is stored as an f32 (1, hidden_p) row plus an
      f32 (1, 1) bias, consumed by a VPU-multiply + lane reduction.
    """
    n = len(params)
    packed = []
    for i, (w, b) in enumerate(params):
        d_in, d_out = w.shape
        d_in_p = d_in if i == 0 else _round_up(d_in, LANE)
        if i == n - 1:
            w_p = jnp.zeros((1, d_in_p), jnp.float32).at[0, :d_in].set(
                w[:, 0].astype(jnp.float32))
            b_p = b.astype(jnp.float32).reshape(1, 1)
        else:
            d_out_p = _round_up(d_out, LANE)
            w_p = jnp.zeros((d_in_p, d_out_p), compute_dtype).at[:d_in, :d_out].set(
                w.astype(compute_dtype))
            b_p = jnp.zeros((1, d_out_p), jnp.float32).at[0, :d_out].set(
                b.astype(jnp.float32))
        packed.append((w_p, b_p))
    return packed


@functools.partial(jax.jit, static_argnames=("batch_tile", "bf16_tanh"))
def critic_forward(emb_state, packed_params, batch_tile=1024, bf16_tanh=False):
    """Run the critic MLP with a single Pallas kernel, tiling over the batch."""
    B, D = emb_state.shape
    Hp = packed_params[0][0].shape[1]
    assert packed_params[0][0].shape[0] == D, "packed W1 input dim != state_dim"

    tb = _pick_batch_tile(B, batch_tile)
    n_tiles = _cdiv(_round_up(B, SUBLANE), tb)
    Bp = n_tiles * tb

    # Pad only the batch dimension (tiny: Bp x D f32); features stay f32 and
    # unpadded -- the bf16 cast and any lane handling happen inside the kernel.
    x = emb_state.astype(jnp.float32)
    if Bp != B:
        x = jnp.zeros((Bp, D), jnp.float32).at[:B].set(x)

    flat_params = []
    in_specs = [pl.BlockSpec((tb, D), lambda i: (i, 0))]
    for w, b in packed_params:
        flat_params.extend((w, b))
        # Weights/biases: same block every step -> DMA'd once, resident in VMEM.
        in_specs.append(pl.BlockSpec(w.shape, lambda i: (0, 0)))
        in_specs.append(pl.BlockSpec(b.shape, lambda i: (0, 0)))

    # Compact output: only the real value column. (tb, 1): last dim equals the
    # full array dim, second-last is a multiple of 8 -> layout rule satisfied.
    out_spec = pl.BlockSpec((tb, 1), lambda i: (i, 0))

    flops = 2 * Bp * (D * Hp + 3 * Hp * Hp + Hp)
    transcendentals = 4 * Bp * Hp
    bytes_accessed = (x.size * x.dtype.itemsize
                      + sum(a.size * a.dtype.itemsize for a in flat_params)
                      + Bp * 4)

    out = pl.pallas_call(
        functools.partial(critic_mlp_kernel, bf16_tanh=bf16_tanh),
        out_shape=jax.ShapeDtypeStruct((Bp, 1), jnp.float32),
        grid_spec=pltpu.PrefetchScalarGridSpec(
            num_scalar_prefetch=0,
            grid=(n_tiles,),
            in_specs=in_specs,
            out_specs=out_spec,
        ),
        compiler_params=pltpu.CompilerParams(
            dimension_semantics=("parallel",)),
        # NOTE: per-tile VMEM is <2 MiB at the default batch_tile, far below the
        # scoped-VMEM defaults on v5e/v6e/v7x; set vmem_limit_bytes here only if
        # callers push batch_tile to >=4096 on v5e.
        cost_estimate=pl.CostEstimate(
            flops=flops,
            transcendentals=transcendentals,
            bytes_accessed=bytes_accessed),
    )(x, *flat_params)

    return out[:B]   # drop batch padding; already the (B, 1) value column


def critic_forward_ref(emb_state, params):
    """Pure-JAX f32 reference for correctness checking."""
    h = emb_state
    for i, (w, b) in enumerate(params):
        h = h @ w + b
        if i < len(params) - 1:
            h = jnp.tanh(h)
    return h


if __name__ == "__main__":
    # Small shapes consistent with the module: batch=8, state_dim=32, hidden=128
    # (lane-aligned, a small stand-in for the PyTorch default hidden=512).
    B, STATE_DIM, HIDDEN = 8, 32, 128

    key = jax.random.PRNGKey(0)
    k_x, k_p, k_x2 = jax.random.split(key, 3)

    params = make_critic_params(k_p, STATE_DIM, HIDDEN, dtype=jnp.float32)
    packed = pack_critic_params(params, compute_dtype=jnp.bfloat16)

    use_bf16_tanh = _tpu_supports_bf16_eup()

    # Primary small-shape check (single tile).
    emb_state = jax.random.normal(k_x, (B, STATE_DIM), dtype=jnp.float32)
    out = jax.block_until_ready(
        critic_forward(emb_state, packed, batch_tile=1024, bf16_tanh=use_bf16_tanh))
    ref = critic_forward_ref(emb_state, params)
    assert out.shape == (B, 1)
    # bf16 matmul operands -> loosen tolerance vs the f32 reference.
    assert jnp.allclose(out, ref, atol=5e-2, rtol=5e-2), "mismatch vs reference (small)"

    # Secondary check: ragged mid-size batch -> 2 'parallel' grid steps
    # (exercises batch padding, the v7x tile split, and the compact output path).
    B2 = 1000
    emb_state2 = jax.random.normal(k_x2, (B2, STATE_DIM), dtype=jnp.float32)
    out2 = jax.block_until_ready(
        critic_forward(emb_state2, packed, batch_tile=1024, bf16_tanh=use_bf16_tanh))
    ref2 = critic_forward_ref(emb_state2, params)
    assert out2.shape == (B2, 1)
    assert jnp.allclose(out2, ref2, atol=5e-2, rtol=5e-2), "mismatch vs reference (ragged)"

    print("KERNEL_OK")
</pallas_src>

<mosaic_0001>
module attributes {stable_mosaic.version = 11 : i64} {
  func.func @critic_mlp_kernel(%arg0: i32, %arg1: memref<8x32xf32, #tpu.memory_space<vmem>>, %arg2: memref<32x128xbf16, #tpu.memory_space<vmem>>, %arg3: memref<1x128xf32, #tpu.memory_space<vmem>>, %arg4: memref<128x128xbf16, #tpu.memory_space<vmem>>, %arg5: memref<1x128xf32, #tpu.memory_space<vmem>>, %arg6: memref<128x128xbf16, #tpu.memory_space<vmem>>, %arg7: memref<1x128xf32, #tpu.memory_space<vmem>>, %arg8: memref<128x128xbf16, #tpu.memory_space<vmem>>, %arg9: memref<1x128xf32, #tpu.memory_space<vmem>>, %arg10: memref<1x128xf32, #tpu.memory_space<vmem>>, %arg11: memref<1x1xf32, #tpu.memory_space<vmem>>, %arg12: memref<8x1xf32, #tpu.memory_space<vmem>>) attributes {dimension_semantics = [#tpu.dimension_semantics<parallel>], iteration_bounds = array<i64: 1>, scalar_prefetch = 0 : i64, scratch_operands = 0 : i64, tpu.core_type = #tpu.core_type<tc>, window_params = [{transform_indices = @transform_0, window_bounds = array<i64: 8, 32>}, {pipeline_mode = #tpu.pipeline_mode<synchronous>, transform_indices = @transform_1, window_bounds = array<i64: 32, 128>}, {pipeline_mode = #tpu.pipeline_mode<synchronous>, transform_indices = @transform_2, window_bounds = array<i64: 1, 128>}, {pipeline_mode = #tpu.pipeline_mode<synchronous>, transform_indices = @transform_3, window_bounds = array<i64: 128, 128>}, {pipeline_mode = #tpu.pipeline_mode<synchronous>, transform_indices = @transform_4, window_bounds = array<i64: 1, 128>}, {pipeline_mode = #tpu.pipeline_mode<synchronous>, transform_indices = @transform_5, window_bounds = array<i64: 128, 128>}, {pipeline_mode = #tpu.pipeline_mode<synchronous>, transform_indices = @transform_6, window_bounds = array<i64: 1, 128>}, {pipeline_mode = #tpu.pipeline_mode<synchronous>, transform_indices = @transform_7, window_bounds = array<i64: 128, 128>}, {pipeline_mode = #tpu.pipeline_mode<synchronous>, transform_indices = @transform_8, window_bounds = array<i64: 1, 128>}, {pipeline_mode = #tpu.pipeline_mode<synchronous>, transform_indices = @transform_9, window_bounds = array<i64: 1, 128>}, {pipeline_mode = #tpu.pipeline_mode<synchronous>, transform_indices = @transform_10, window_bounds = array<i64: 1, 1>}, {transform_indices = @transform_11, window_bounds = array<i64: 8, 1>}]} {
    %c0 = arith.constant 0 : index
    %c0_0 = arith.constant 0 : index
    %0 = vector.load %arg1[%c0, %c0_0] : memref<8x32xf32, #tpu.memory_space<vmem>>, vector<8x32xf32>
    %1 = arith.truncf %0 : vector<8x32xf32> to vector<8x32xbf16>
    %c0_1 = arith.constant 0 : index
    %c0_2 = arith.constant 0 : index
    %2 = vector.load %arg2[%c0_1, %c0_2] : memref<32x128xbf16, #tpu.memory_space<vmem>>, vector<32x128xbf16>
    %cst = arith.constant dense<0.000000e+00> : vector<8x128xf32>
    %3 = tpu.matmul %1, %2, %cst {dimension_numbers = #tpu.dot_dimension_numbers<[1], [0], [0], [1], [0, 0, 1, 1], [], []>} : vector<8x32xbf16>, vector<32x128xbf16>, vector<8x128xf32> -> vector<8x128xf32>
    %c0_3 = arith.constant 0 : index
    %c0_4 = arith.constant 0 : index
    %4 = vector.load %arg3[%c0_3, %c0_4] : memref<1x128xf32, #tpu.memory_space<vmem>>, vector<1x128xf32>
    %5 = vector.broadcast %4 : vector<1x128xf32> to vector<8x128xf32>
    %6 = arith.addf %3, %5 : vector<8x128xf32>
    %7 = math.tanh %6 : vector<8x128xf32>
    %8 = arith.truncf %7 : vector<8x128xf32> to vector<8x128xbf16>
    %c0_5 = arith.constant 0 : index
    %c0_6 = arith.constant 0 : index
    %9 = vector.load %arg4[%c0_5, %c0_6] : memref<128x128xbf16, #tpu.memory_space<vmem>>, vector<128x128xbf16>
    %cst_7 = arith.constant dense<0.000000e+00> : vector<8x128xf32>
    %10 = tpu.matmul %8, %9, %cst_7 {dimension_numbers = #tpu.dot_dimension_numbers<[1], [0], [0], [1], [0, 0, 1, 1], [], []>} : vector<8x128xbf16>, vector<128x128xbf16>, vector<8x128xf32> -> vector<8x128xf32>
    %c0_8 = arith.constant 0 : index
    %c0_9 = arith.constant 0 : index
    %11 = vector.load %arg5[%c0_8, %c0_9] : memref<1x128xf32, #tpu.memory_space<vmem>>, vector<1x128xf32>
    %12 = vector.broadcast %11 : vector<1x128xf32> to vector<8x128xf32>
    %13 = arith.addf %10, %12 : vector<8x128xf32>
    %14 = math.tanh %13 : vector<8x128xf32>
    %15 = arith.truncf %14 : vector<8x128xf32> to vector<8x128xbf16>
    %c0_10 = arith.constant 0 : index
    %c0_11 = arith.constant 0 : index
    %16 = vector.load %arg6[%c0_10, %c0_11] : memref<128x128xbf16, #tpu.memory_space<vmem>>, vector<128x128xbf16>
    %cst_12 = arith.constant dense<0.000000e+00> : vector<8x128xf32>
    %17 = tpu.matmul %15, %16, %cst_12 {dimension_numbers = #tpu.dot_dimension_numbers<[1], [0], [0], [1], [0, 0, 1, 1], [], []>} : vector<8x128xbf16>, vector<128x128xbf16>, vector<8x128xf32> -> vector<8x128xf32>
    %c0_13 = arith.constant 0 : index
    %c0_14 = arith.constant 0 : index
    %18 = vector.load %arg7[%c0_13, %c0_14] : memref<1x128xf32, #tpu.memory_space<vmem>>, vector<1x128xf32>
    %19 = vector.broadcast %18 : vector<1x128xf32> to vector<8x128xf32>
    %20 = arith.addf %17, %19 : vector<8x128xf32>
    %21 = math.tanh %20 : vector<8x128xf32>
    %22 = arith.truncf %21 : vector<8x128xf32> to vector<8x128xbf16>
    %c0_15 = arith.constant 0 : index
    %c0_16 = arith.constant 0 : index
    %23 = vector.load %arg8[%c0_15, %c0_16] : memref<128x128xbf16, #tpu.memory_space<vmem>>, vector<128x128xbf16>
    %cst_17 = arith.constant dense<0.000000e+00> : vector<8x128xf32>
    %24 = tpu.matmul %22, %23, %cst_17 {dimension_numbers = #tpu.dot_dimension_numbers<[1], [0], [0], [1], [0, 0, 1, 1], [], []>} : vector<8x128xbf16>, vector<128x128xbf16>, vector<8x128xf32> -> vector<8x128xf32>
    %c0_18 = arith.constant 0 : index
    %c0_19 = arith.constant 0 : index
    %25 = vector.load %arg9[%c0_18, %c0_19] : memref<1x128xf32, #tpu.memory_space<vmem>>, vector<1x128xf32>
    %26 = vector.broadcast %25 : vector<1x128xf32> to vector<8x128xf32>
    %27 = arith.addf %24, %26 : vector<8x128xf32>
    %28 = math.tanh %27 : vector<8x128xf32>
    %29 = arith.truncf %28 : vector<8x128xf32> to vector<8x128xbf16>
    %c0_20 = arith.constant 0 : index
    %c0_21 = arith.constant 0 : index
    %30 = vector.load %arg10[%c0_20, %c0_21] : memref<1x128xf32, #tpu.memory_space<vmem>>, vector<1x128xf32>
    %31 = arith.extf %29 : vector<8x128xbf16> to vector<8x128xf32>
    %32 = vector.broadcast %30 : vector<1x128xf32> to vector<8x128xf32>
    %33 = arith.mulf %31, %32 : vector<8x128xf32>
    %cst_22 = arith.constant dense<0.000000e+00> : vector<8xf32>
    %34 = vector.multi_reduction <add>, %33, %cst_22 [1] : vector<8x128xf32> to vector<8xf32>
    %35 = vector.shape_cast %34 : vector<8xf32> to vector<8x1xf32>
    %c0_23 = arith.constant 0 : index
    %c0_24 = arith.constant 0 : index
    %36 = vector.load %arg11[%c0_23, %c0_24] : memref<1x1xf32, #tpu.memory_space<vmem>>, vector<1x1xf32>
    %37 = vector.broadcast %36 : vector<1x1xf32> to vector<8x1xf32>
    %38 = arith.addf %35, %37 : vector<8x1xf32>
    %c0_25 = arith.constant 0 : index
    %c0_26 = arith.constant 0 : index
    %39 = vector.load %arg12[%c0_25, %c0_26] : memref<8x1xf32, #tpu.memory_space<vmem>>, vector<8x1xf32>
    tpu.vector_store %arg12[%c0_25, %c0_26], %38 {strides = array<i32>} : memref<8x1xf32, #tpu.memory_space<vmem>>, vector<8x1xf32>,
    return
  }
  func.func @transform_0(%arg0: i32) -> (i32, i32) {
    %c0_i32 = arith.constant 0 : i32
    %c0_i32_0 = arith.constant 0 : i32
    return %arg0, %c0_i32 : i32, i32
  }
  func.func @transform_1(%arg0: i32) -> (i32, i32) {
    %c0_i32 = arith.constant 0 : i32
    %c0_i32_0 = arith.constant 0 : i32
    %c0_i32_1 = arith.constant 0 : i32
    return %c0_i32, %c0_i32_0 : i32, i32
  }
  func.func @transform_2(%arg0: i32) -> (i32, i32) {
    %c0_i32 = arith.constant 0 : i32
    %c0_i32_0 = arith.constant 0 : i32
    %c0_i32_1 = arith.constant 0 : i32
    return %c0_i32, %c0_i32_0 : i32, i32
  }
  func.func @transform_3(%arg0: i32) -> (i32, i32) {
    %c0_i32 = arith.constant 0 : i32
    %c0_i32_0 = arith.constant 0 : i32
    %c0_i32_1 = arith.constant 0 : i32
    return %c0_i32, %c0_i32_0 : i32, i32
  }
  func.func @transform_4(%arg0: i32) -> (i32, i32) {
    %c0_i32 = arith.constant 0 : i32
    %c0_i32_0 = arith.constant 0 : i32
    %c0_i32_1 = arith.constant 0 : i32
    return %c0_i32, %c0_i32_0 : i32, i32
  }
  func.func @transform_5(%arg0: i32) -> (i32, i32) {
    %c0_i32 = arith.constant 0 : i32
    %c0_i32_0 = arith.constant 0 : i32
    %c0_i32_1 = arith.constant 0 : i32
    return %c0_i32, %c0_i32_0 : i32, i32
  }
  func.func @transform_6(%arg0: i32) -> (i32, i32) {
    %c0_i32 = arith.constant 0 : i32
    %c0_i32_0 = arith.constant 0 : i32
    %c0_i32_1 = arith.constant 0 : i32
    return %c0_i32, %c0_i32_0 : i32, i32
  }
  func.func @transform_7(%arg0: i32) -> (i32, i32) {
    %c0_i32 = arith.constant 0 : i32
    %c0_i32_0 = arith.constant 0 : i32
    %c0_i32_1 = arith.constant 0 : i32
    return %c0_i32, %c0_i32_0 : i32, i32
  }
  func.func @transform_8(%arg0: i32) -> (i32, i32) {
    %c0_i32 = arith.constant 0 : i32
    %c0_i32_0 = arith.constant 0 : i32
    %c0_i32_1 = arith.constant 0 : i32
    return %c0_i32, %c0_i32_0 : i32, i32
  }
  func.func @transform_9(%arg0: i32) -> (i32, i32) {
    %c0_i32 = arith.constant 0 : i32
    %c0_i32_0 = arith.constant 0 : i32
    %c0_i32_1 = arith.constant 0 : i32
    return %c0_i32, %c0_i32_0 : i32, i32
  }
  func.func @transform_10(%arg0: i32) -> (i32, i32) {
    %c0_i32 = arith.constant 0 : i32
    %c0_i32_0 = arith.constant 0 : i32
    %c0_i32_1 = arith.constant 0 : i32
    return %c0_i32, %c0_i32_0 : i32, i32
  }
  func.func @transform_11(%arg0: i32) -> (i32, i32) {
    %c0_i32 = arith.constant 0 : i32
    %c0_i32_0 = arith.constant 0 : i32
    return %arg0, %c0_i32 : i32, i32
  }
}

</mosaic_0001>

<bundles_post_ra>
// kernel: critic_forward.1
= control target key start
LH: loop header
LB: loop body
LE: loop exit
PB: predicated region body
PF: predicated region fallthrough
CT: control target
= control target key end

     0   :  { %s810_s0 = inlined_call_operand.hbm [shape: f32[8,32], index: 0, kind: input, shape index: {}]   ;;  %s811_s1 = inlined_call_operand.hbm [shape: bf16[32,128], index: 1, kind: input, shape index: {}]   ;;  %s812_s2 = inlined_call_operand.vmem [shape: f32[1,128], index: 2, kind: input, shape index: {}]   ;;  %s813_s3 = inlined_call_operand.hbm [shape: bf16[128,128], index: 3, kind: input, shape index: {}]   ;;  %s814_s4 = inlined_call_operand.vmem [shape: f32[1,128], index: 4, kind: input, shape index: {}]   ;;  %s815_s5 = inlined_call_operand.hbm [shape: bf16[128,128], index: 5, kind: input, shape index: {}]   ;;  %s816_s6 = inlined_call_operand.vmem [shape: f32[1,128], index: 6, kind: input, shape index: {}]   ;;  %s817_s7 = inlined_call_operand.hbm [shape: bf16[128,128], index: 7, kind: input, shape index: {}]   ;;  %s818_s8 = inlined_call_operand.vmem [shape: f32[1,128], index: 8, kind: input, shape index: {}]   ;;  %s819_s9 = inlined_call_operand.vmem [shape: f32[1,128], index: 9, kind: input, shape index: {}]   ;;  %s820_s10 = inlined_call_operand.<no memory space> [shape: f32[1,1], index: 10, kind: input, shape index: {}]   ;;  %s821_s11 = inlined_call_operand.vmem [shape: f32[8,1], index: 11, kind: output, shape index: {}]  }
   0x1   :  { %v16_v0 = vstv %s820_s10 }
   0x2   :  { %17 = vst [vmem:[#allocation2] sm:$0x1] %v16_v0 }
   0x3   :  { %18 = vsyncpa [#allocation4], 0 }
   0x4   :  { %19 = vsyncpa [#allocation6], 0  ;;  %s36_s21 = sshll.u32 %s811_s1, 4  ;;  %s37_s21 = int_to_ptr.hbm [resolvable:$true] %s36_s21 }
   0x5   :  { %20 = vsyncpa [#allocation9], 0  ;;  %s707_s22 = smov [#allocation5]   ;;  %s66_s26 = sshll.u32 %s815_s5, 4  ;;  %s67_s26 = int_to_ptr.hbm [resolvable:$true] %s66_s26 }
   0x6   :  { %s38_s23 = sshll.u32 %s707_s22, 4  ;;  %s708_s27 = smov 64   ;;  %s39_s23 = int_to_ptr.vmem [resolvable:$true] %s38_s23 }
   0x7   :  { %s709_s28 = smov 4   ;;  %s710_s10 = smov [#allocation8]  }
   0x8   :  { %44 = dma.hbm_to_vmem [thread:$0]  %s37_s21, 256, %s39_s23, [#allocation6], %s708_s27, %s708_s27, %s709_s28  }
   0x9   :  { %s68_s29 = sshll.u32 %s710_s10, 4  ;;  %s26_s13 = sshll.u32 %s810_s0, 4  ;;  %s69_s29 = int_to_ptr.vmem [resolvable:$true] %s68_s29  ;;  %s27_s13 = int_to_ptr.hbm [resolvable:$true] %s26_s13 }
   0xa   :  { %74 = dma.hbm_to_vmem [thread:$0]  %s67_s26, 1024, %s69_s29, [#allocation9], %s708_s27, %s708_s27, %s709_s28  }
   0xb   :  { %s51_s15 = sshll.u32 %s813_s3, 4  ;;  %s711_s16 = smov [#allocation3]   ;;  %s52_s15 = int_to_ptr.hbm [resolvable:$true] %s51_s15 }
   0xc   :  { %s28_s17 = sshll.u32 %s711_s16, 4  ;;  %s712_s5 = smov [#allocation7]   ;;  %s29_s17 = int_to_ptr.vmem [resolvable:$true] %s28_s17 }
   0xd   :  { %31 = dma.hbm_to_vmem [thread:$0]  %s27_s13, 128, %s29_s17, [#allocation4]  }
   0xe   :  { %s53_s18 = sshll.u32 %s712_s5, 4  ;;  %s81_s21 = sshll.u32 %s817_s7, 4  ;;  %s54_s18 = int_to_ptr.vmem [resolvable:$true] %s53_s18  ;;  %s82_s21 = int_to_ptr.hbm [resolvable:$true] %s81_s21 }
   0xf   :  { %59 = dma.hbm_to_vmem [thread:$0]  %s52_s15, 1024, %s54_s18, [#allocation6], %s708_s27, %s708_s27, %s709_s28  }
  0x10   :  { %s713_s0 = smov [#allocation10]  }
  0x11   :  { %s83_s22 = sshll.u32 %s713_s0, 4  ;;  %s84_s22 = int_to_ptr.vmem [resolvable:$true] %s83_s22 }
  0x12   :  { %89 = dma.hbm_to_vmem [thread:$0]  %s82_s21, 1024, %s84_s22, [#allocation9], %s708_s27, %s708_s27, %s709_s28  }
  0x13   :  { %701 = dma.done.wait [#allocation4], 128  }
  0x14   :  { %702 = vsyncadd [#allocation4], 4294967168 }
  0x15   :  { %703 = dma.done.wait [#allocation6], 1280  }
  0x16   :  { %704 = vsyncadd [#allocation6], 4294966016 }
  0x17   :  { %705 = dma.done.wait [#allocation9], 2048  }
  0x18   :  { %706 = vsyncadd [#allocation9], 4294965248  ;;  %v535_v1 = vld [vmem:[#allocation5 + $0x8] sm:$0xff]  ;;  %v534_v3 = vld [vmem:[#allocation5] sm:$0xff]  ;;  %vm139_vm0 = vcmask 261120   ;;  %vm420_vm1 = vcmask 7168  }
  0x19   :  { %v543_v2 = vld [vmem:[#allocation7 + $0x38] sm:$0xff]  ;;  %149 = vmatpush.bf16.msra.mxu0 %v535_v1  ;;  %v117_v4 = vld [vmem:[#allocation3] sm:$0xff]  ;;  %v542_v5 = vld [vmem:[#allocation7 + $0x30] sm:$0xff] }
  0x1a   :  { %226 = vmatpush.bf16.msra.mxu1 %v543_v2  ;;  %v118_v6 = vpack.c.bf16 %v117_v4, %v117_v4  ;;  %v541_v7 = vld [vmem:[#allocation7 + $0x28] sm:$0xff]  ;;  %v540_v8 = vld [vmem:[#allocation7 + $0x20] sm:$0xff]  ;;  %v539_v9 = vld [vmem:[#allocation7 + $0x18] sm:$0xff] }
  0x1b   :  { %v538_v10 = vld [vmem:[#allocation7 + $0x10] sm:$0xff]  ;;  %v537_v11 = vld [vmem:[#allocation7 + $0x8] sm:$0xff]  ;;  %v536_v12 = vld [vmem:[#allocation7] sm:$0xff] }
  0x1c   :  { %v551_v13 = vld [vmem:[#allocation8 + $0x38] sm:$0xff]  ;;  %v550_v14 = vld [vmem:[#allocation8 + $0x30] sm:$0xff]  ;;  %v549_v15 = vld [vmem:[#allocation8 + $0x28] sm:$0xff] }
  0x1d   :  { %150 = vmatpush.bf16.msra.mxu0 %v534_v3  ;;  %309 = vmatpush.bf16.msra.mxu2 %v551_v13  ;;  %v548_v16 = vld [vmem:[#allocation8 + $0x20] sm:$0xff]  ;;  %v547_v17 = vld [vmem:[#allocation8 + $0x18] sm:$0xff]  ;;  %v546_v24 = vld [vmem:[#allocation8 + $0x10] sm:$0xff] }
  0x1e   :  { %227 = vmatpush.bf16.msra.mxu1 %v542_v5  ;;  %v567_v18 = vld [vmem:[%s812_s2] ss:$0 sm:$0xff]  ;;  %v545_v25 = vld [vmem:[#allocation8 + $0x8] sm:$0xff]  ;;  %v559_v27 = vld [vmem:[#allocation10 + $0x38] sm:$0xff] }
  0x1f   :  { %v544_v26 = vld [vmem:[#allocation8] sm:$0xff]  ;;  %392 = vmatpush.bf16.msra.mxu3 %v559_v27  ;;  %v558_v28 = vld [vmem:[#allocation10 + $0x30] sm:$0xff]  ;;  %v557_v29 = vld [vmem:[#allocation10 + $0x28] sm:$0xff] }
  0x20   :  { %437 = vmatmul.msk.bf16.vlgmr.msra.gmra.mxu0 %vm139_vm0, %v118_v6  ;;  %v556_v30 = vld [vmem:[#allocation10 + $0x20] sm:$0xff]  ;;  %v555_v31 = vld [vmem:[#allocation10 + $0x18] sm:$0xff]  ;;  %v554_v38 = vld [vmem:[#allocation10 + $0x10] sm:$0xff] }
  0x21   :  { %310 = vmatpush.bf16.msra.mxu2 %v550_v14  ;;  %v568_v32 = vld [vmem:[%s814_s4] ss:$0 sm:$0xff]  ;;  %v553_v39 = vld [vmem:[#allocation10 + $0x8] sm:$0xff] }
  0x22   :  { %228 = vmatpush.bf16.msra.mxu1 %v541_v7  ;;  %v552_v40 = vld [vmem:[#allocation10] sm:$0xff] }
  0x23   :  { %393 = vmatpush.bf16.msra.mxu3 %v558_v28  ;;  %v569_v41 = vld [vmem:[%s816_s6] ss:$0 sm:$0xff] }
  0x24   :  { %v570_v47 = vld [vmem:[%s818_s8] ss:$0 sm:$0xff] }
  0x25   :  { %311 = vmatpush.bf16.msra.mxu2 %v549_v15  ;;  %v571_v53 = vld [vmem:[%s819_s9] ss:$0 sm:$0xff] }
  0x26   :  { %229 = vmatpush.bf16.msra.mxu1 %v540_v8  ;;  %v572_v56 = vld [vmem:[#allocation2] ss:$0 sm:$0xff] }
  0x27   :  { %394 = vmatpush.bf16.msra.mxu3 %v557_v29 }
  0x29   :  { %312 = vmatpush.bf16.msra.mxu2 %v548_v16 }
  0x2a   :  { %230 = vmatpush.bf16.msra.mxu1 %v539_v9 }
  0x2b   :  { %395 = vmatpush.bf16.msra.mxu3 %v556_v30 }
  0x2d   :  { %313 = vmatpush.bf16.msra.mxu2 %v547_v17 }
  0x2e   :  { %231 = vmatpush.bf16.msra.mxu1 %v538_v10 }
  0x2f   :  { %396 = vmatpush.bf16.msra.mxu3 %v555_v31 }
  0x31   :  { %314 = vmatpush.bf16.msra.mxu2 %v546_v24 }
  0x32   :  { %232 = vmatpush.bf16.msra.mxu1 %v537_v11 }
  0x33   :  { %397 = vmatpush.bf16.msra.mxu3 %v554_v38 }
  0x35   :  { %315 = vmatpush.bf16.msra.mxu2 %v545_v25 }
  0x36   :  { %233 = vmatpush.bf16.msra.mxu1 %v536_v12 }
  0x37   :  { %398 = vmatpush.bf16.msra.mxu3 %v553_v39 }
  0x39   :  { %316 = vmatpush.bf16.msra.mxu2 %v544_v26 }
  0x3b   :  { %399 = vmatpush.bf16.msra.mxu3 %v552_v40 }
  0x9d   :  { %v152_v19 = vpop.f32.mrf.mxu0 }
  0x9e   :  { %v153_v20 = vadd.f32 %v567_v18, %v152_v19 }
  0xa0   :  { %573 = vtanh.f32 %v153_v20 }
  0xa5   :  { %v154_v21 = vpop.f32.mrf.mxu0 }
  0xa6   :  { %v574_v22 = vpop.eup %573 }
  0xa7   :  { %v157_v23 = vpack.c.bf16 %v574_v22, %v574_v22 }
  0xa9   :  { %234 = vmatmul.bf16.vlgmr.msra.gmra.mxu1 %v157_v23 }
 0x126   :  { %v235_v33 = vpop.f32.mrf.mxu1 }
 0x127   :  { %v236_v34 = vadd.f32 %v568_v32, %v235_v33 }
 0x129   :  { %575 = vtanh.f32 %v236_v34 }
 0x12e   :  { %v237_v35 = vpop.f32.mrf.mxu1 }
 0x12f   :  { %v576_v36 = vpop.eup %575 }
 0x130   :  { %v240_v37 = vpack.c.bf16 %v576_v36, %v576_v36 }
 0x132   :  { %317 = vmatmul.bf16.vlgmr.msra.gmra.mxu2 %v240_v37 }
 0x1b5   :  { %v318_v42 = vpop.f32.mrf.mxu2 }
 0x1b6   :  { %v319_v43 = vadd.f32 %v569_v41, %v318_v42 }
 0x1b8   :  { %577 = vtanh.f32 %v319_v43 }
 0x1bd   :  { %v320_v44 = vpop.f32.mrf.mxu2 }
 0x1be   :  { %v578_v45 = vpop.eup %577 }
 0x1bf   :  { %v323_v46 = vpack.c.bf16 %v578_v45, %v578_v45 }
 0x1c1   :  { %400 = vmatmul.bf16.vlgmr.msra.gmra.mxu3 %v323_v46 }
 0x244   :  { %v401_v48 = vpop.f32.mrf.mxu3 }
 0x245   :  { %v402_v49 = vadd.f32 %v570_v47, %v401_v48 }
 0x247   :  { %579 = vtanh.f32 %v402_v49 }
 0x24c   :  { %v403_v50 = vpop.f32.mrf.mxu3 }
 0x24d   :  { %v580_v51 = vpop.eup %579 }
 0x24e   :  { %v406_v52 = vpack.c.bf16 %v580_v51, %v580_v51 }
 0x250   :  { %v408_v54 = vunpack.c.l.bf16 %v406_v52 }
 0x252   :  { %v412_v55 = vmul.f32 %v571_v53, %v408_v54 }
 0x254   :  { %413 = vadd.xlane.f32.xlu0 %v412_v55 }
 0x2c7   :  { %v414_v57 = vpop.xlane.xlu0 %413 }
 0x2c8   :  { %v419_v58 = vadd.f32 %v572_v56, %v414_v57 }
 0x2ca   :  { %421 = vst.msk [vmem:[%s821_s11] sm:$0xff] %vm420_vm1, %v419_v58 }
 0x2cb   :  { %426 = vsyncpa [#allocation4], 1 }
 0x2cc   :  { %427 = vsyncpa [#allocation6], 1 }
 0x2cd   :  { %428 = vsyncpa [#allocation9], 1 }

</bundles_post_ra>
